<compile_context>
chip_gen: v7x
topology: tpu7x:2x2x1
jax: 0.10.0
libtpu: 0.0.40
codegen_flags: <defaults>
</compile_context>

<pallas_src>
import functools

import jax
import jax.numpy as jnp
from jax import lax
from jax.experimental import pallas as pl
from jax.experimental.pallas import tpu as pltpu

LANES = 128
MAX_BLOCK_ROWS = 2048   # 2048x128 f32 = 1 MiB per input tile.


def _ftl_partial_kernel(x_ref, t_ref, tp_ref, sp_ref, st_ref,
                        *, n_rows, need_mask):
    """Per-tile lane-wise partial sums: sum(p*t), sum(p), sum(t)."""
    block_rows = x_ref.shape[0]

    p = jax.nn.sigmoid(x_ref[...].astype(jnp.float32))
    t = t_ref[...].astype(jnp.float32)

    if need_mask:
        # Only emitted when grid * block_rows != rows: zero out the
        # out-of-range rows of the ragged last tile.  Pure VPU work, hidden
        # under the HBM bound.
        i = pl.program_id(0)
        row = lax.broadcasted_iota(jnp.int32, p.shape, 0)
        valid = (i * block_rows + row) < n_rows
        p = jnp.where(valid, p, 0.0)
        t = jnp.where(valid, t, 0.0)

    # Lane-wise partial sums; the cross-lane reduction is deferred to the
    # (tiny) JAX epilogue.
    tp_ref[0] = jnp.sum(p * t, axis=0, keepdims=True)   # (1, 128)
    sp_ref[0] = jnp.sum(p, axis=0, keepdims=True)
    st_ref[0] = jnp.sum(t, axis=0, keepdims=True)


def focal_tversky_loss(inputs, targets, smooth=1, alpha=0.8, beta=0.2, gamma=2):
    """JAX/Pallas equivalent of focal_tversky_loss.forward. Returns a scalar."""
    x = inputs.reshape(-1)
    t = targets.reshape(-1)           # native dtype; cast happens in-kernel
    n = x.shape[0]

    rem = n % LANES
    if rem:
        # Rare lane-tail pad (<128 elems).  sigmoid(-1e9) == 0 and target == 0,
        # so padded elements contribute nothing to any of the sums.
        pad = LANES - rem
        x = jnp.pad(x, (0, pad), constant_values=-1e9)
        t = jnp.pad(t, (0, pad), constant_values=0)

    rows = x.shape[0] // LANES
    x2 = x.reshape(rows, LANES)       # free reshape (row-major)
    t2 = t.reshape(rows, LANES)

    if rows <= MAX_BLOCK_ROWS:
        block_rows = rows             # full-extent block, single grid step
        grid = 1
        need_mask = False
    else:
        block_rows = MAX_BLOCK_ROWS   # fixed large tile, near HBM roofline
        grid = pl.cdiv(rows, block_rows)
        need_mask = (grid * block_rows != rows)

    kernel = functools.partial(_ftl_partial_kernel,
                               n_rows=rows, need_mask=need_mask)

    part_shape = jax.ShapeDtypeStruct((grid, 1, LANES), jnp.float32)
    part_spec = pl.BlockSpec((1, 1, LANES), lambda i: (i, 0, 0))
    in_spec = pl.BlockSpec((block_rows, LANES), lambda i: (i, 0))

    tp_part, sp_part, st_part = pl.pallas_call(
        kernel,
        out_shape=(part_shape, part_shape, part_shape),
        grid=(grid,),
        in_specs=[in_spec, in_spec],
        out_specs=(part_spec, part_spec, part_spec),
        compiler_params=pltpu.CompilerParams(
            dimension_semantics=("parallel",),   # independent per-block partials
        ),
    )(x2, t2)

    # Tiny epilogue: combine per-block lane partials, then Tversky/focal math.
    TP = jnp.sum(tp_part)
    sum_p = jnp.sum(sp_part)
    sum_t = jnp.sum(st_part)
    FP = sum_p - TP                 # == sum((1 - t) * p)
    FN = sum_t - TP                 # == sum(t * (1 - p))
    tversky = (TP + smooth) / (TP + alpha * FP + beta * FN + smooth)
    return (1.0 - tversky) ** gamma


def _reference(inputs, targets, smooth=1, alpha=0.8, beta=0.2, gamma=2):
    p = jax.nn.sigmoid(inputs.astype(jnp.float32)).reshape(-1)
    t = targets.astype(jnp.float32).reshape(-1)
    TP = jnp.sum(p * t)
    FP = jnp.sum((1.0 - t) * p)
    FN = jnp.sum(t * (1.0 - p))
    tversky = (TP + smooth) / (TP + alpha * FP + beta * FN + smooth)
    return (1.0 - tversky) ** gamma


if __name__ == "__main__":
    key = jax.random.PRNGKey(0)
    k1, k2 = jax.random.split(key)
    # NCHW, consistent with a segmentation head: (batch, channels, H, W)
    x = jax.random.normal(k1, (2, 4, 16, 16), dtype=jnp.float32)            # logits
    y = (jax.random.uniform(k2, (2, 4, 16, 16)) > 0.5).astype(jnp.float32)  # binary targets

    loss = focal_tversky_loss(x, y)
    loss = jax.block_until_ready(loss)

    ref = _reference(x, y)
    assert jnp.allclose(loss, ref, rtol=1e-5, atol=1e-6), (loss, ref)
    print("KERNEL_OK")
</pallas_src>

<mosaic_0001>
module attributes {stable_mosaic.version = 11 : i64} {
  func.func @_ftl_partial_kernel(%arg0: i32, %arg1: memref<16x128xf32, #tpu.memory_space<vmem>>, %arg2: memref<16x128xf32, #tpu.memory_space<vmem>>, %arg3: memref<1x1x128xf32, #tpu.memory_space<vmem>>, %arg4: memref<1x1x128xf32, #tpu.memory_space<vmem>>, %arg5: memref<1x1x128xf32, #tpu.memory_space<vmem>>) attributes {dimension_semantics = [#tpu.dimension_semantics<parallel>], iteration_bounds = array<i64: 1>, scalar_prefetch = 0 : i64, scratch_operands = 0 : i64, tpu.core_type = #tpu.core_type<tc>, window_params = [{transform_indices = @transform_0, window_bounds = array<i64: 16, 128>}, {transform_indices = @transform_1, window_bounds = array<i64: 16, 128>}, {transform_indices = @transform_2, window_bounds = array<i64: 1, 1, 128>}, {transform_indices = @transform_3, window_bounds = array<i64: 1, 1, 128>}, {transform_indices = @transform_4, window_bounds = array<i64: 1, 1, 128>}]} {
    %c0 = arith.constant 0 : index
    %c0_0 = arith.constant 0 : index
    %0 = vector.load %arg1[%c0, %c0_0] : memref<16x128xf32, #tpu.memory_space<vmem>>, vector<16x128xf32>
    %1 = arith.negf %0 : vector<16x128xf32>
    %2 = math.exp %1 : vector<16x128xf32>
    %cst = arith.constant 1.000000e+00 : f32
    %3 = vector.broadcast %cst : f32 to vector<16x128xf32>
    %4 = arith.addf %3, %2 : vector<16x128xf32>
    %5 = arith.divf %3, %4 : vector<16x128xf32>
    %c0_1 = arith.constant 0 : index
    %c0_2 = arith.constant 0 : index
    %6 = vector.load %arg2[%c0_1, %c0_2] : memref<16x128xf32, #tpu.memory_space<vmem>>, vector<16x128xf32>
    %7 = arith.mulf %5, %6 : vector<16x128xf32>
    %cst_3 = arith.constant dense<0.000000e+00> : vector<128xf32>
    %8 = vector.multi_reduction <add>, %7, %cst_3 [0] : vector<16x128xf32> to vector<128xf32>
    %9 = vector.shape_cast %8 : vector<128xf32> to vector<1x128xf32>
    %c0_4 = arith.constant 0 : index
    %c0_5 = arith.constant 0 : index
    %c0_6 = arith.constant 0 : index
    %10 = vector.load %arg3[%c0_4, %c0_5, %c0_6] : memref<1x1x128xf32, #tpu.memory_space<vmem>>, vector<1x1x128xf32>
    %11 = vector.shape_cast %10 : vector<1x1x128xf32> to vector<1x128xf32>
    %12 = vector.shape_cast %9 : vector<1x128xf32> to vector<1x1x128xf32>
    tpu.vector_store %arg3[%c0_4, %c0_5, %c0_6], %12 {strides = array<i32>} : memref<1x1x128xf32, #tpu.memory_space<vmem>>, vector<1x1x128xf32>,
    %cst_7 = arith.constant dense<0.000000e+00> : vector<128xf32>
    %13 = vector.multi_reduction <add>, %5, %cst_7 [0] : vector<16x128xf32> to vector<128xf32>
    %14 = vector.shape_cast %13 : vector<128xf32> to vector<1x128xf32>
    %c0_8 = arith.constant 0 : index
    %c0_9 = arith.constant 0 : index
    %c0_10 = arith.constant 0 : index
    %15 = vector.load %arg4[%c0_8, %c0_9, %c0_10] : memref<1x1x128xf32, #tpu.memory_space<vmem>>, vector<1x1x128xf32>
    %16 = vector.shape_cast %15 : vector<1x1x128xf32> to vector<1x128xf32>
    %17 = vector.shape_cast %14 : vector<1x128xf32> to vector<1x1x128xf32>
    tpu.vector_store %arg4[%c0_8, %c0_9, %c0_10], %17 {strides = array<i32>} : memref<1x1x128xf32, #tpu.memory_space<vmem>>, vector<1x1x128xf32>,
    %cst_11 = arith.constant dense<0.000000e+00> : vector<128xf32>
    %18 = vector.multi_reduction <add>, %6, %cst_11 [0] : vector<16x128xf32> to vector<128xf32>
    %19 = vector.shape_cast %18 : vector<128xf32> to vector<1x128xf32>
    %c0_12 = arith.constant 0 : index
    %c0_13 = arith.constant 0 : index
    %c0_14 = arith.constant 0 : index
    %20 = vector.load %arg5[%c0_12, %c0_13, %c0_14] : memref<1x1x128xf32, #tpu.memory_space<vmem>>, vector<1x1x128xf32>
    %21 = vector.shape_cast %20 : vector<1x1x128xf32> to vector<1x128xf32>
    %22 = vector.shape_cast %19 : vector<1x128xf32> to vector<1x1x128xf32>
    tpu.vector_store %arg5[%c0_12, %c0_13, %c0_14], %22 {strides = array<i32>} : memref<1x1x128xf32, #tpu.memory_space<vmem>>, vector<1x1x128xf32>,
    return
  }
  func.func @transform_0(%arg0: i32) -> (i32, i32) {
    %c0_i32 = arith.constant 0 : i32
    %c0_i32_0 = arith.constant 0 : i32
    return %arg0, %c0_i32 : i32, i32
  }
  func.func @transform_1(%arg0: i32) -> (i32, i32) {
    %c0_i32 = arith.constant 0 : i32
    %c0_i32_0 = arith.constant 0 : i32
    return %arg0, %c0_i32 : i32, i32
  }
  func.func @transform_2(%arg0: i32) -> (i32, i32, i32) {
    %c0_i32 = arith.constant 0 : i32
    %c0_i32_0 = arith.constant 0 : i32
    %c0_i32_1 = arith.constant 0 : i32
    return %arg0, %c0_i32, %c0_i32_0 : i32, i32, i32
  }
  func.func @transform_3(%arg0: i32) -> (i32, i32, i32) {
    %c0_i32 = arith.constant 0 : i32
    %c0_i32_0 = arith.constant 0 : i32
    %c0_i32_1 = arith.constant 0 : i32
    return %arg0, %c0_i32, %c0_i32_0 : i32, i32, i32
  }
  func.func @transform_4(%arg0: i32) -> (i32, i32, i32) {
    %c0_i32 = arith.constant 0 : i32
    %c0_i32_0 = arith.constant 0 : i32
    %c0_i32_1 = arith.constant 0 : i32
    return %arg0, %c0_i32, %c0_i32_0 : i32, i32, i32
  }
}

</mosaic_0001>

<bundles_post_ra>
// kernel: tpu_custom_call.1
= control target key start
LH: loop header
LB: loop body
LE: loop exit
PB: predicated region body
PF: predicated region fallthrough
CT: control target
= control target key end

     0   :  { %10 = vsyncpa [#allocation3], 0  ;;  %s372_s0 = inlined_call_operand.hbm [shape: f32[16,128], index: 0, kind: input, shape index: {}]   ;;  %s373_s1 = inlined_call_operand.hbm [shape: f32[16,128], index: 1, kind: input, shape index: {}]   ;;  %s374_s2 = inlined_call_operand.hbm [shape: f32[1,1,128], index: 2, kind: output, shape index: {0}]   ;;  %s375_s3 = inlined_call_operand.hbm [shape: f32[1,1,128], index: 3, kind: output, shape index: {1}]   ;;  %s376_s4 = inlined_call_operand.hbm [shape: f32[1,1,128], index: 4, kind: output, shape index: {2}]  }
   0x1   :  { %11 = vsyncpa [#allocation6], 0 }
   0x2   :  { %12 = vsyncpa [#allocation4], 0 }
   0x3   :  { %13 = vsyncpa [#allocation9], 0  ;;  %s264_s15 = smov [#allocation2]   ;;  %s146_s19 = scalar_lea.hbm %s372_s0, 256 }
   0x4   :  { %s19_s16 = sshll.u32 %s264_s15, 4  ;;  %p147_p0 = scmp.ne.s32.totalorder %s372_s0, %s146_s19  ;;  %s20_s16 = int_to_ptr.vmem [resolvable:$true] %s19_s16 }
   0x5   :  { %p150_p1 = scmp.lt.u32.totalorder %s146_s19, %s372_s0 }
   0x7   :  { %p152_p2 = pnand %p150_p1, %p147_p0 }
   0x9   :  { %155 = shalt.err (!%p152_p2)
}
   0xa   :  { %s156_s24 = scalar_lea.vmem %s20_s16, 256  ;;  %p161_p4 = scmp.lt.s32.totalorder %s20_s16, %s20_s16 }
   0xb   :  { %p157_p3 = scmp.ne.s32.totalorder %s20_s16, %s156_s24  ;;  %p162_p5 = scmp.lt.s32.totalorder %s156_s24, %s156_s24 }
   0xd   :  { %p163_p6 = por %p162_p5, %p161_p4 }
   0xf   :  { %p164_p7 = pnand %p163_p6, %p157_p3 }
  0x11   :  { %167 = shalt.err (!%p164_p7)
}
  0x12   :  { %s265_s25 = smov 128   ;;  %s266_s26 = smov 8  }
  0x13   :  { %25 = dma.hbm_to_vmem [thread:$0]  %s372_s0, 256, %s20_s16, [#allocation3], %s265_s25, %s265_s25, %s266_s26  }
  0x14   :  { %s267_s29 = smov [#allocation5]   ;;  %s168_s7 = scalar_lea.hbm %s373_s1, 256 }
  0x15   :  { %s31_s30 = sshll.u32 %s267_s29, 4  ;;  %p169_p8 = scmp.ne.s32.totalorder %s373_s1, %s168_s7  ;;  %s32_s30 = int_to_ptr.vmem [resolvable:$true] %s31_s30 }
  0x16   :  { %p172_p9 = scmp.lt.u32.totalorder %s168_s7, %s373_s1 }
  0x18   :  { %p174_p10 = pnand %p172_p9, %p169_p8 }
  0x1a   :  { %177 = shalt.err (!%p174_p10)
}
  0x1b   :  { %s178_s12 = scalar_lea.vmem %s32_s30, 256  ;;  %p183_p12 = scmp.lt.s32.totalorder %s32_s30, %s32_s30 }
  0x1c   :  { %p179_p11 = scmp.ne.s32.totalorder %s32_s30, %s178_s12  ;;  %p184_p13 = scmp.lt.s32.totalorder %s178_s12, %s178_s12 }
  0x1e   :  { %p185_p0 = por %p184_p13, %p183_p12 }
  0x20   :  { %p186_p1 = pnand %p185_p0, %p179_p11 }
  0x22   :  { %189 = shalt.err (!%p186_p1)
}
  0x23   :  { %37 = dma.hbm_to_vmem [thread:$0]  %s373_s1, 256, %s32_s30, [#allocation6], %s265_s25, %s265_s25, %s266_s26  }
  0x24   :  { %256 = dma.done.wait [#allocation3], 256  }
  0x25   :  { %257 = vsyncadd [#allocation3], 4294967040 }
  0x26   :  { %258 = dma.done.wait [#allocation6], 256  }
  0x27   :  { %259 = vsyncadd [#allocation6], 4294967040  ;;  %v44_v0 = vld [vmem:[#allocation2] sm:$0xff]  ;;  %v45_v1 = vld [vmem:[#allocation2 + $0x8] sm:$0xff]  ;;  %s268_s1 = smov [#allocation8]   ;;  %s269_s15 = smov [#allocation10]  }
  0x28   :  { %v129_v2 = vmul.f32 -1.442695, %v44_v0  ;;  %v130_v3 = vmul.f32 -1.442695, %v45_v1  ;;  %v58_v4 = vld [vmem:[#allocation5] sm:$0xff]  ;;  %v59_v5 = vld [vmem:[#allocation5 + $0x8] sm:$0xff] }
  0x29   :  { %v78_v6 = vadd.f32 %v59_v5, %v58_v4  ;;  %s102_s14 = sshll.u32 %s268_s1, 4  ;;  %s112_s16 = sshll.u32 %s269_s15, 4  ;;  %s103_s14 = int_to_ptr.vmem [resolvable:$true] %s102_s14  ;;  %s320_s16 = int_to_ptr.vmem [resolvable:$true] %s112_s16 }
  0x2a   :  { %138 = vpow2.f32 %v129_v2  ;;  %s270_s17 = smov [#allocation7]   ;;  %s190_s19 = scalar_lea.vmem %s103_s14, 16 }
  0x2b   :  { %140 = vpow2.f32 %v130_v3  ;;  %v79_v7 = vrot.slane %v78_v6, 4  ;;  %s92_s18 = sshll.u32 %s270_s17, 4  ;;  %p191_p2 = scmp.ne.s32.totalorder %s103_s14, %s190_s19  ;;  %s322_s18 = int_to_ptr.vmem [resolvable:$true] %s92_s18 }
  0x2c   :  { %s194_s20 = scalar_lea.vmem %s103_s14, 32  ;;  %p195_p3 = scmp.lt.s32.totalorder %s103_s14, %s103_s14 }
  0x2d   :  { %v80_v8 = vadd.f32 %v79_v7, %v78_v6  ;;  %p196_p4 = scmp.lt.s32.totalorder %s194_s20, %s190_s19 }
  0x2f   :  { %v81_v9 = vrot.slane %v80_v8, 2  ;;  %p197_p5 = por %p196_p4, %p195_p3 }
  0x31   :  { %v82_v10 = vadd.f32 %v81_v9, %v80_v8  ;;  %p198_p6 = pnand %p197_p5, %p191_p2 }
  0x33   :  { %v83_v11 = vrot.slane %v82_v10, 1 }
  0x34   :  { %v139_v12 = vpop.eup %138 }
  0x35   :  { %v141_v13 = vpop.eup %140  ;;  %v52_v14 = vadd.f32 1.0, %v139_v12  ;;  %v84_v15 = vadd.f32 %v83_v11, %v82_v10 }
  0x36   :  { %v53_v16 = vadd.f32 1.0, %v141_v13 }
  0x37   :  { %142 = vrcp.f32 %v52_v14  ;;  %85 = vst [vmem:[#allocation10] sm:$0x1] %v84_v15 }
  0x38   :  { %144 = vrcp.f32 %v53_v16 }
  0x41   :  { %v143_v17 = vpop.eup %142 }
  0x42   :  { %v145_v18 = vpop.eup %144  ;;  %v60_v19 = vmul.f32 %v143_v17, %v58_v4 }
  0x43   :  { %v70_v20 = vadd.f32 %v145_v18, %v143_v17  ;;  %v61_v21 = vmul.f32 %v145_v18, %v59_v5 }
  0x45   :  { %v71_v22 = vrot.slane %v70_v20, 4  ;;  %v62_v23 = vadd.f32 %v61_v21, %v60_v19 }
  0x47   :  { %v72_v24 = vadd.f32 %v71_v22, %v70_v20  ;;  %v63_v25 = vrot.slane %v62_v23, 4 }
  0x49   :  { %v73_v26 = vrot.slane %v72_v24, 2  ;;  %v64_v27 = vadd.f32 %v63_v25, %v62_v23 }
  0x4b   :  { %v74_v28 = vadd.f32 %v73_v26, %v72_v24  ;;  %v65_v29 = vrot.slane %v64_v27, 2 }
  0x4d   :  { %v75_v30 = vrot.slane %v74_v28, 1  ;;  %v66_v31 = vadd.f32 %v65_v29, %v64_v27 }
  0x4f   :  { %v76_v32 = vadd.f32 %v75_v30, %v74_v28  ;;  %v67_v33 = vrot.slane %v66_v31, 1 }
  0x51   :  { %77 = vst [vmem:[#allocation8] sm:$0x1] %v76_v32  ;;  %v68_v34 = vadd.f32 %v67_v33, %v66_v31 }
  0x52   :  { %201 = shalt.err (!%p198_p6)
}
  0x53   :  { %s202_s23 = scalar_lea.hbm %s375_s3, 16 }
  0x54   :  { %p203_p7 = scmp.ne.s32.totalorder %s375_s3, %s202_s23  ;;  %p206_p8 = scmp.lt.u32.totalorder %s202_s23, %s375_s3 }
  0x56   :  { %p208_p9 = pnand %p206_p8, %p203_p7 }
  0x58   :  { %211 = shalt.err (!%p208_p9)
}
  0x59   :  { %105 = dma.vmem_to_hbm [thread:$0]  %s103_s14, 16, %s375_s3, [#allocation9]   ;;  %69 = vst [vmem:[#allocation7] sm:$0x1] %v68_v34 }
  0x5a   :  { %s212_s30 = scalar_lea.vmem %s320_s16, 16  ;;  %s216_s5 = scalar_lea.vmem %s320_s16, 32 }
  0x5b   :  { %p213_p10 = scmp.ne.s32.totalorder %s320_s16, %s212_s30  ;;  %p217_p11 = scmp.lt.s32.totalorder %s320_s16, %s320_s16 }
  0x5c   :  { %p218_p12 = scmp.lt.s32.totalorder %s216_s5, %s212_s30 }
  0x5e   :  { %p219_p13 = por %p218_p12, %p217_p11 }
  0x60   :  { %p220_p0 = pnand %p219_p13, %p213_p10 }
  0x62   :  { %223 = shalt.err (!%p220_p0)
}
  0x63   :  { %s224_s8 = scalar_lea.hbm %s376_s4, 16 }
  0x64   :  { %p225_p1 = scmp.ne.s32.totalorder %s376_s4, %s224_s8  ;;  %p228_p2 = scmp.lt.u32.totalorder %s224_s8, %s376_s4 }
  0x66   :  { %p230_p3 = pnand %p228_p2, %p225_p1 }
  0x68   :  { %233 = shalt.err (!%p230_p3)
}
  0x69   :  { %115 = dma.vmem_to_hbm [thread:$0]  %s320_s16, 16, %s376_s4, [#allocation9]  }
  0x6a   :  { %s234_s13 = scalar_lea.vmem %s322_s18, 16  ;;  %s238_s1 = scalar_lea.vmem %s322_s18, 32 }
  0x6b   :  { %p235_p4 = scmp.ne.s32.totalorder %s322_s18, %s234_s13  ;;  %p239_p5 = scmp.lt.s32.totalorder %s322_s18, %s322_s18 }
  0x6c   :  { %p240_p6 = scmp.lt.s32.totalorder %s238_s1, %s234_s13 }
  0x6e   :  { %p241_p7 = por %p240_p6, %p239_p5 }
  0x70   :  { %p242_p8 = pnand %p241_p7, %p235_p4 }
  0x72   :  { %245 = shalt.err (!%p242_p8)
}
  0x73   :  { %s246_s17 = scalar_lea.hbm %s374_s2, 16 }
  0x74   :  { %p247_p9 = scmp.ne.s32.totalorder %s374_s2, %s246_s17  ;;  %p250_p10 = scmp.lt.u32.totalorder %s246_s17, %s374_s2 }
  0x76   :  { %p252_p11 = pnand %p250_p10, %p247_p9 }
  0x78   :  { %255 = shalt.err (!%p252_p11)
}
  0x79   :  { %95 = dma.vmem_to_hbm [thread:$0]  %s322_s18, 16, %s374_s2, [#allocation4]  }
  0x7a   :  { %260 = dma.done.wait [#allocation4], 16  }
  0x7b   :  { %261 = vsyncadd [#allocation4], 4294967280 }
  0x7c   :  { %262 = dma.done.wait [#allocation9], 32  }
  0x7d   :  { %263 = vsyncadd [#allocation9], 4294967264 }
  0x7e   :  { %125 = vsyncpa [#allocation3], 1 }
  0x7f   :  { %126 = vsyncpa [#allocation6], 1 }
  0x80   :  { %127 = vsyncpa [#allocation4], 1 }
  0x81   :  { %128 = vsyncpa [#allocation9], 1 }

</bundles_post_ra>
